<compile_context>
chip_gen: v7x
topology: tpu7x:2x2x1
jax: 0.10.0
libtpu: 0.0.40
codegen_flags: <defaults>
</compile_context>

<pallas_src>
import math
from functools import partial

import jax
import jax.numpy as jnp
from jax import lax
from jax.experimental import pallas as pl
from jax.experimental.pallas import tpu as pltpu

H1, H2, H3 = 128, 128, 64          # hidden sizes from the PyTorch module
BN_EPS = 1e-5


def _round_up(x, m):
    return ((x + m - 1) // m) * m


# ---------------------------------------------------------------------------
# Pass 1: h1 = fc1(state); accumulate batch sum / sum-of-squares of h1.
# ---------------------------------------------------------------------------
def _fc1_stats_kernel(state_ref, w1_ref, b1_ref, h1_ref, stats_ref,
                      *, true_batch, block_batch):
    i = pl.program_id(0)

    x = jnp.dot(state_ref[...].astype(w1_ref.dtype), w1_ref[...],
                preferred_element_type=jnp.float32) + b1_ref[...]
    h1_ref[...] = x

    # Mask batch-padding rows so they do not pollute the BN statistics.
    row = i * block_batch + lax.broadcasted_iota(jnp.int32, x.shape, 0)
    xm = jnp.where(row < true_batch, x, 0.0)
    part = jnp.concatenate(
        [jnp.sum(xm, axis=0, keepdims=True),
         jnp.sum(xm * xm, axis=0, keepdims=True)], axis=0)      # (2, H1)

    @pl.when(i == 0)
    def _():
        stats_ref[...] = jnp.zeros_like(stats_ref)

    stats_ref[...] += part


# ---------------------------------------------------------------------------
# Pass 2: BN(apply) + ReLU + fc2(concat with action) + ReLU + fc3 + ReLU + fc4.
# ---------------------------------------------------------------------------
def _head_kernel(h1_ref, act_ref, stats_ref, gamma_ref, beta_ref,
                 w2x_ref, w2a_ref, b2_ref, w3_ref, b3_ref, w4_ref, b4_ref,
                 out_ref, *, true_batch):
    inv_n = 1.0 / float(true_batch)
    mean = stats_ref[0:1, :] * inv_n
    var = jnp.maximum(stats_ref[1:2, :] * inv_n - mean * mean, 0.0)
    inv_std = lax.rsqrt(var + BN_EPS)

    scale = gamma_ref[...] * inv_std                  # (1, H1)
    shift = beta_ref[...] - mean * scale              # (1, H1)
    x = jnp.maximum(h1_ref[...] * scale + shift, 0.0)

    # fc2 over concat([x, action]) == x @ W2x + action @ W2a + b2
    h = jnp.dot(x.astype(w2x_ref.dtype), w2x_ref[...],
                preferred_element_type=jnp.float32) + b2_ref[...]
    act = act_ref[...]
    a_dim = act.shape[-1]
    if a_dim <= 8:
        # Tiny contraction (K = action_size): do it on the VPU instead of
        # paying a full MXU issue + result-FIFO pop for a K=4 matmul.
        w2a = w2a_ref[...].astype(jnp.float32)
        for k in range(a_dim):
            h = h + act[:, k:k + 1] * w2a[k:k + 1, :]
    else:
        h = h + jnp.dot(act.astype(w2a_ref.dtype), w2a_ref[...],
                        preferred_element_type=jnp.float32)
    h = jnp.maximum(h, 0.0)

    # fc3
    h = jnp.dot(h.astype(w3_ref.dtype), w3_ref[...],
                preferred_element_type=jnp.float32) + b3_ref[...]
    h = jnp.maximum(h, 0.0)

    # fc4 (N=1): VPU multiply + lane reduction instead of an N=1 MXU matmul.
    q = jnp.sum(h * w4_ref[...], axis=-1, keepdims=True) + b4_ref[...]
    out_ref[...] = q.astype(out_ref.dtype)


# ---------------------------------------------------------------------------
# Wrapper
# ---------------------------------------------------------------------------
def critic_forward(state, action, params, *, block_batch=512, matmul_dtype=None):
    """Pallas forward pass. Returns Q values of shape [B, 1] (float32)."""
    B, S = state.shape
    A = action.shape[1]

    # ---- batch tiling ------------------------------------------------------
    n_t = max(1, pl.cdiv(B, block_batch))      # number of batch tiles
    tb = _round_up(pl.cdiv(B, n_t), 8)         # rows per tile (sublane multiple)
    b_pad = tb * n_t
    if b_pad != B:
        state = jnp.pad(state, ((0, b_pad - B), (0, 0)))
        action = jnp.pad(action, ((0, b_pad - B), (0, 0)))

    # Optional low-precision matmul operands (recommended bf16 on v6e/v7x).
    cdt = jnp.float32 if matmul_dtype is None else matmul_dtype
    w1 = params["w1"].astype(cdt)
    w2x = params["w2x"].astype(cdt)
    w2a = params["w2a"].astype(cdt)
    w3 = params["w3"].astype(cdt)

    const = lambda i: (0, 0)
    row_tile = lambda i: (i, 0)

    # ---- pass 1: fc1 + BN batch statistics ----------------------------------
    h1, stats = pl.pallas_call(
        partial(_fc1_stats_kernel, true_batch=B, block_batch=tb),
        grid=(n_t,),
        in_specs=[
            pl.BlockSpec((tb, S), row_tile),     # state tile (streamed)
            pl.BlockSpec((S, H1), const),        # w1        (VMEM-resident)
            pl.BlockSpec((1, H1), const),        # b1
        ],
        out_specs=(
            pl.BlockSpec((tb, H1), row_tile),    # h1 tile
            pl.BlockSpec((2, H1), const),        # [sum; sum_sq] (grid-resident)
        ),
        out_shape=(
            jax.ShapeDtypeStruct((b_pad, H1), jnp.float32),
            jax.ShapeDtypeStruct((2, H1), jnp.float32),
        ),
        compiler_params=pltpu.CompilerParams(
            dimension_semantics=("arbitrary",)),   # stats accumulate over tiles
        cost_estimate=pl.CostEstimate(
            flops=2 * b_pad * S * H1 + 4 * b_pad * H1,
            transcendentals=0,
            bytes_accessed=4 * (b_pad * S + S * H1 + H1 + b_pad * H1 + 2 * H1)),
    )(state, w1, params["b1"])

    # ---- pass 2: BN apply + fc2..fc4 ----------------------------------------
    q = pl.pallas_call(
        partial(_head_kernel, true_batch=B),
        grid=(n_t,),
        in_specs=[
            pl.BlockSpec((tb, H1), row_tile),    # h1 tile     (streamed)
            pl.BlockSpec((tb, A), row_tile),     # action tile (streamed)
            pl.BlockSpec((2, H1), const),        # BN stats    (VMEM-resident)
            pl.BlockSpec((1, H1), const),        # gamma
            pl.BlockSpec((1, H1), const),        # beta
            pl.BlockSpec((H1, H2), const),       # w2x
            pl.BlockSpec((A, H2), const),        # w2a
            pl.BlockSpec((1, H2), const),        # b2
            pl.BlockSpec((H2, H3), const),       # w3
            pl.BlockSpec((1, H3), const),        # b3
            pl.BlockSpec((1, H3), const),        # w4 (row vector)
            pl.BlockSpec((1, 1), const),         # b4
        ],
        out_specs=pl.BlockSpec((tb, 1), row_tile),
        out_shape=jax.ShapeDtypeStruct((b_pad, 1), jnp.float32),
        compiler_params=pltpu.CompilerParams(
            # independent tiles -> shard grid steps across both TCs on v7x
            dimension_semantics=("parallel",)),
        cost_estimate=pl.CostEstimate(
            flops=2 * b_pad * (H1 * H2 + A * H2 + H2 * H3 + H3) + 6 * b_pad * H1,
            transcendentals=n_t * H1,
            bytes_accessed=4 * (b_pad * (H1 + A + 1) + H1 * H2 + A * H2
                                + H2 * H3 + 2 * H1 + H2 + 2 * H3 + 1 + 2 * H1)),
    )(h1, action, stats, params["gamma"], params["beta"],
      w2x, w2a, params["b2"], w3, params["b3"], params["w4"], params["b4"])

    # TODO(synk): PyTorch BatchNorm1d (training mode) also updates
    # running_mean/running_var; that stateful side effect is not emitted here
    # (forward values only).
    return q[:B]


def init_critic_params(key, state_size, action_size):
    """PyTorch nn.Linear-style init (uniform +/- 1/sqrt(fan_in)); weights are
    stored pre-transposed as [in, out] so the kernels compute y = x @ W + b;
    fc4's weight is stored as a [1, 64] row for the VPU reduction."""
    def uni(k, shape, fan_in):
        bound = 1.0 / math.sqrt(fan_in)
        return jax.random.uniform(k, shape, jnp.float32, -bound, bound)

    ks = jax.random.split(key, 8)
    w2 = uni(ks[2], (H1 + action_size, H2), H1 + action_size)
    return {
        "w1": uni(ks[0], (state_size, H1), state_size),
        "b1": uni(ks[1], (1, H1), state_size),
        "gamma": jnp.ones((1, H1), jnp.float32),     # BatchNorm1d weight
        "beta": jnp.zeros((1, H1), jnp.float32),     # BatchNorm1d bias
        "w2x": w2[:H1, :], "w2a": w2[H1:, :],        # fc2 weight split at concat
        "b2": uni(ks[3], (1, H2), H1 + action_size),
        "w3": uni(ks[4], (H2, H3), H2),
        "b3": uni(ks[5], (1, H3), H2),
        "w4": uni(ks[6], (1, H3), H3),               # fc4 weight as a row
        "b4": uni(ks[7], (1, 1), H3),
    }


def critic_reference(state, action, params):
    """Pure-JAX reference matching the PyTorch module (training-mode BN)."""
    x = state @ params["w1"] + params["b1"]
    mean = jnp.mean(x, axis=0, keepdims=True)
    var = jnp.mean(jnp.square(x - mean), axis=0, keepdims=True)
    x = (x - mean) * lax.rsqrt(var + BN_EPS)
    x = jnp.maximum(x * params["gamma"] + params["beta"], 0.0)
    h = jnp.maximum(x @ params["w2x"] + action @ params["w2a"] + params["b2"], 0.0)
    h = jnp.maximum(h @ params["w3"] + params["b3"], 0.0)
    return h @ params["w4"].T + params["b4"]


if __name__ == "__main__":
    batch, state_size, action_size = 8, 32, 4

    key = jax.random.PRNGKey(0)
    kp, ks, ka = jax.random.split(key, 3)
    params = init_critic_params(kp, state_size, action_size)
    state = jax.random.normal(ks, (batch, state_size), jnp.float32)
    action = jax.random.normal(ka, (batch, action_size), jnp.float32)

    q = jax.jit(critic_forward)(state, action, params)
    jax.block_until_ready(q)
    assert q.shape == (batch, 1)

    with jax.default_matmul_precision("highest"):
        q_ref = critic_reference(state, action, params)
    assert jnp.allclose(q, q_ref, atol=5e-2, rtol=5e-2), \
        float(jnp.max(jnp.abs(q - q_ref)))

    print("KERNEL_OK")
</pallas_src>

<mosaic_0001>
module attributes {stable_mosaic.version = 11 : i64} {
  func.func @_fc1_stats_kernel(%arg0: i32, %arg1: memref<8x32xf32, #tpu.memory_space<vmem>>, %arg2: memref<32x128xf32, #tpu.memory_space<vmem>>, %arg3: memref<1x128xf32, #tpu.memory_space<vmem>>, %arg4: memref<8x128xf32, #tpu.memory_space<vmem>>, %arg5: memref<2x128xf32, #tpu.memory_space<vmem>>) attributes {dimension_semantics = [#tpu.dimension_semantics<arbitrary>], iteration_bounds = array<i64: 1>, scalar_prefetch = 0 : i64, scratch_operands = 0 : i64, tpu.core_type = #tpu.core_type<tc>, window_params = [{transform_indices = @transform_0, window_bounds = array<i64: 8, 32>}, {pipeline_mode = #tpu.pipeline_mode<synchronous>, transform_indices = @transform_1, window_bounds = array<i64: 32, 128>}, {pipeline_mode = #tpu.pipeline_mode<synchronous>, transform_indices = @transform_2, window_bounds = array<i64: 1, 128>}, {transform_indices = @transform_3, window_bounds = array<i64: 8, 128>}, {pipeline_mode = #tpu.pipeline_mode<synchronous>, transform_indices = @transform_4, window_bounds = array<i64: 2, 128>}]} {
    %c0 = arith.constant 0 : index
    %c0_0 = arith.constant 0 : index
    %0 = vector.load %arg1[%c0, %c0_0] : memref<8x32xf32, #tpu.memory_space<vmem>>, vector<8x32xf32>
    %c0_1 = arith.constant 0 : index
    %c0_2 = arith.constant 0 : index
    %1 = vector.load %arg2[%c0_1, %c0_2] : memref<32x128xf32, #tpu.memory_space<vmem>>, vector<32x128xf32>
    %cst = arith.constant dense<0.000000e+00> : vector<8x128xf32>
    %2 = tpu.matmul %0, %1, %cst {dimension_numbers = #tpu.dot_dimension_numbers<[1], [0], [0], [1], [0, 0, 1, 1], [], []>} : vector<8x32xf32>, vector<32x128xf32>, vector<8x128xf32> -> vector<8x128xf32>
    %c0_3 = arith.constant 0 : index
    %c0_4 = arith.constant 0 : index
    %3 = vector.load %arg3[%c0_3, %c0_4] : memref<1x128xf32, #tpu.memory_space<vmem>>, vector<1x128xf32>
    %4 = vector.broadcast %3 : vector<1x128xf32> to vector<8x128xf32>
    %5 = arith.addf %2, %4 : vector<8x128xf32>
    %c0_5 = arith.constant 0 : index
    %c0_6 = arith.constant 0 : index
    %6 = vector.load %arg4[%c0_5, %c0_6] : memref<8x128xf32, #tpu.memory_space<vmem>>, vector<8x128xf32>
    tpu.vector_store %arg4[%c0_5, %c0_6], %5 {strides = array<i32>} : memref<8x128xf32, #tpu.memory_space<vmem>>, vector<8x128xf32>,
    %c8_i32 = arith.constant 8 : i32
    %7 = arith.muli %arg0, %c8_i32 : i32
    %8 = tpu.iota {dimensions = array<i32: 0>} : vector<8x128xi32>
    %9 = vector.broadcast %7 : i32 to vector<8x128xi32>
    %10 = arith.addi %9, %8 : vector<8x128xi32>
    %c8_i32_7 = arith.constant 8 : i32
    %11 = vector.broadcast %c8_i32_7 : i32 to vector<8x128xi32>
    %12 = arith.cmpi slt, %10, %11 : vector<8x128xi32>
    %cst_8 = arith.constant 0.000000e+00 : f32
    %13 = vector.broadcast %cst_8 : f32 to vector<8x128xf32>
    %14 = arith.select %12, %5, %13 : vector<8x128xi1>, vector<8x128xf32>
    %cst_9 = arith.constant dense<0.000000e+00> : vector<128xf32>
    %15 = vector.multi_reduction <add>, %14, %cst_9 [0] : vector<8x128xf32> to vector<128xf32>
    %16 = vector.shape_cast %15 : vector<128xf32> to vector<1x128xf32>
    %17 = arith.mulf %14, %14 : vector<8x128xf32>
    %cst_10 = arith.constant dense<0.000000e+00> : vector<128xf32>
    %18 = vector.multi_reduction <add>, %17, %cst_10 [0] : vector<8x128xf32> to vector<128xf32>
    %19 = vector.shape_cast %18 : vector<128xf32> to vector<1x128xf32>
    %20 = tpu.concatenate %16, %19 in 0 : vector<1x128xf32>, vector<1x128xf32> -> vector<2x128xf32>
    %c0_i32 = arith.constant 0 : i32
    %21 = arith.cmpi eq, %arg0, %c0_i32 : i32
    %22 = arith.extui %21 : i1 to i32
    %c0_i32_11 = arith.constant 0 : i32
    %23 = arith.cmpi ne, %22, %c0_i32_11 : i32
    scf.if %23 {
      %cst_16 = arith.constant 0.000000e+00 : f32
      %27 = vector.broadcast %cst_16 : f32 to vector<2x128xf32>
      %c0_17 = arith.constant 0 : index
      %c0_18 = arith.constant 0 : index
      %28 = vector.load %arg5[%c0_17, %c0_18] : memref<2x128xf32, #tpu.memory_space<vmem>>, vector<2x128xf32>
      tpu.vector_store %arg5[%c0_17, %c0_18], %27 {strides = array<i32>} : memref<2x128xf32, #tpu.memory_space<vmem>>, vector<2x128xf32>,
    } else {
    }
    %c0_12 = arith.constant 0 : index
    %c0_13 = arith.constant 0 : index
    %24 = vector.load %arg5[%c0_12, %c0_13] : memref<2x128xf32, #tpu.memory_space<vmem>>, vector<2x128xf32>
    %25 = arith.addf %24, %20 : vector<2x128xf32>
    %c0_14 = arith.constant 0 : index
    %c0_15 = arith.constant 0 : index
    %26 = vector.load %arg5[%c0_14, %c0_15] : memref<2x128xf32, #tpu.memory_space<vmem>>, vector<2x128xf32>
    tpu.vector_store %arg5[%c0_14, %c0_15], %25 {strides = array<i32>} : memref<2x128xf32, #tpu.memory_space<vmem>>, vector<2x128xf32>,
    return
  }
  func.func @transform_0(%arg0: i32) -> (i32, i32) {
    %c0_i32 = arith.constant 0 : i32
    %c0_i32_0 = arith.constant 0 : i32
    return %arg0, %c0_i32 : i32, i32
  }
  func.func @transform_1(%arg0: i32) -> (i32, i32) {
    %c0_i32 = arith.constant 0 : i32
    %c0_i32_0 = arith.constant 0 : i32
    %c0_i32_1 = arith.constant 0 : i32
    return %c0_i32, %c0_i32_0 : i32, i32
  }
  func.func @transform_2(%arg0: i32) -> (i32, i32) {
    %c0_i32 = arith.constant 0 : i32
    %c0_i32_0 = arith.constant 0 : i32
    %c0_i32_1 = arith.constant 0 : i32
    return %c0_i32, %c0_i32_0 : i32, i32
  }
  func.func @transform_3(%arg0: i32) -> (i32, i32) {
    %c0_i32 = arith.constant 0 : i32
    %c0_i32_0 = arith.constant 0 : i32
    return %arg0, %c0_i32 : i32, i32
  }
  func.func @transform_4(%arg0: i32) -> (i32, i32) {
    %c0_i32 = arith.constant 0 : i32
    %c0_i32_0 = arith.constant 0 : i32
    %c0_i32_1 = arith.constant 0 : i32
    return %c0_i32, %c0_i32_0 : i32, i32
  }
}

module attributes {stable_mosaic.version = 11 : i64} {
  func.func @_head_kernel(%arg0: i32, %arg1: memref<8x128xf32, #tpu.memory_space<vmem>>, %arg2: memref<8x4xf32, #tpu.memory_space<vmem>>, %arg3: memref<2x128xf32, #tpu.memory_space<vmem>>, %arg4: memref<1x128xf32, #tpu.memory_space<vmem>>, %arg5: memref<1x128xf32, #tpu.memory_space<vmem>>, %arg6: memref<128x128xf32, #tpu.memory_space<vmem>>, %arg7: memref<4x128xf32, #tpu.memory_space<vmem>>, %arg8: memref<1x128xf32, #tpu.memory_space<vmem>>, %arg9: memref<128x64xf32, #tpu.memory_space<vmem>>, %arg10: memref<1x64xf32, #tpu.memory_space<vmem>>, %arg11: memref<1x64xf32, #tpu.memory_space<vmem>>, %arg12: memref<1x1xf32, #tpu.memory_space<vmem>>, %arg13: memref<8x1xf32, #tpu.memory_space<vmem>>) attributes {dimension_semantics = [#tpu.dimension_semantics<parallel>], iteration_bounds = array<i64: 1>, scalar_prefetch = 0 : i64, scratch_operands = 0 : i64, tpu.core_type = #tpu.core_type<tc>, window_params = [{transform_indices = @transform_0, window_bounds = array<i64: 8, 128>}, {transform_indices = @transform_1, window_bounds = array<i64: 8, 4>}, {pipeline_mode = #tpu.pipeline_mode<synchronous>, transform_indices = @transform_2, window_bounds = array<i64: 2, 128>}, {pipeline_mode = #tpu.pipeline_mode<synchronous>, transform_indices = @transform_3, window_bounds = array<i64: 1, 128>}, {pipeline_mode = #tpu.pipeline_mode<synchronous>, transform_indices = @transform_4, window_bounds = array<i64: 1, 128>}, {pipeline_mode = #tpu.pipeline_mode<synchronous>, transform_indices = @transform_5, window_bounds = array<i64: 128, 128>}, {pipeline_mode = #tpu.pipeline_mode<synchronous>, transform_indices = @transform_6, window_bounds = array<i64: 4, 128>}, {pipeline_mode = #tpu.pipeline_mode<synchronous>, transform_indices = @transform_7, window_bounds = array<i64: 1, 128>}, {pipeline_mode = #tpu.pipeline_mode<synchronous>, transform_indices = @transform_8, window_bounds = array<i64: 128, 64>}, {pipeline_mode = #tpu.pipeline_mode<synchronous>, transform_indices = @transform_9, window_bounds = array<i64: 1, 64>}, {pipeline_mode = #tpu.pipeline_mode<synchronous>, transform_indices = @transform_10, window_bounds = array<i64: 1, 64>}, {pipeline_mode = #tpu.pipeline_mode<synchronous>, transform_indices = @transform_11, window_bounds = array<i64: 1, 1>}, {transform_indices = @transform_12, window_bounds = array<i64: 8, 1>}]} {
    %c0 = arith.constant 0 : index
    %c0_0 = arith.constant 0 : index
    %0 = vector.load %arg3[%c0, %c0_0] : memref<2x128xf32, #tpu.memory_space<vmem>>, vector<1x128xf32>
    %cst = arith.constant 1.250000e-01 : f32
    %1 = vector.broadcast %cst : f32 to vector<1x128xf32>
    %2 = arith.mulf %0, %1 : vector<1x128xf32>
    %c1 = arith.constant 1 : index
    %c0_1 = arith.constant 0 : index
    %3 = vector.load %arg3[%c1, %c0_1] : memref<2x128xf32, #tpu.memory_space<vmem>>, vector<1x128xf32>
    %cst_2 = arith.constant 1.250000e-01 : f32
    %4 = vector.broadcast %cst_2 : f32 to vector<1x128xf32>
    %5 = arith.mulf %3, %4 : vector<1x128xf32>
    %6 = arith.mulf %2, %2 : vector<1x128xf32>
    %7 = arith.subf %5, %6 : vector<1x128xf32>
    %cst_3 = arith.constant 0.000000e+00 : f32
    %8 = vector.broadcast %cst_3 : f32 to vector<1x128xf32>
    %9 = arith.maximumf %7, %8 : vector<1x128xf32>
    %cst_4 = arith.constant 9.99999974E-6 : f32
    %10 = vector.broadcast %cst_4 : f32 to vector<1x128xf32>
    %11 = arith.addf %9, %10 : vector<1x128xf32>
    %12 = math.rsqrt %11 : vector<1x128xf32>
    %c0_5 = arith.constant 0 : index
    %c0_6 = arith.constant 0 : index
    %13 = vector.load %arg4[%c0_5, %c0_6] : memref<1x128xf32, #tpu.memory_space<vmem>>, vector<1x128xf32>
    %14 = arith.mulf %13, %12 : vector<1x128xf32>
    %c0_7 = arith.constant 0 : index
    %c0_8 = arith.constant 0 : index
    %15 = vector.load %arg5[%c0_7, %c0_8] : memref<1x128xf32, #tpu.memory_space<vmem>>, vector<1x128xf32>
    %16 = arith.mulf %2, %14 : vector<1x128xf32>
    %17 = arith.subf %15, %16 : vector<1x128xf32>
    %c0_9 = arith.constant 0 : index
    %c0_10 = arith.constant 0 : index
    %18 = vector.load %arg1[%c0_9, %c0_10] : memref<8x128xf32, #tpu.memory_space<vmem>>, vector<8x128xf32>
    %19 = vector.broadcast %14 : vector<1x128xf32> to vector<8x128xf32>
    %20 = arith.mulf %18, %19 : vector<8x128xf32>
    %21 = vector.broadcast %17 : vector<1x128xf32> to vector<8x128xf32>
    %22 = arith.addf %20, %21 : vector<8x128xf32>
    %cst_11 = arith.constant 0.000000e+00 : f32
    %23 = vector.broadcast %cst_11 : f32 to vector<8x128xf32>
    %24 = arith.maximumf %22, %23 : vector<8x128xf32>
    %c0_12 = arith.constant 0 : index
    %c0_13 = arith.constant 0 : index
    %25 = vector.load %arg6[%c0_12, %c0_13] : memref<128x128xf32, #tpu.memory_space<vmem>>, vector<128x128xf32>
    %cst_14 = arith.constant dense<0.000000e+00> : vector<8x128xf32>
    %26 = tpu.matmul %24, %25, %cst_14 {dimension_numbers = #tpu.dot_dimension_numbers<[1], [0], [0], [1], [0, 0, 1, 1], [], []>} : vector<8x128xf32>, vector<128x128xf32>, vector<8x128xf32> -> vector<8x128xf32>
    %c0_15 = arith.constant 0 : index
    %c0_16 = arith.constant 0 : index
    %27 = vector.load %arg8[%c0_15, %c0_16] : memref<1x128xf32, #tpu.memory_space<vmem>>, vector<1x128xf32>
    %28 = vector.broadcast %27 : vector<1x128xf32> to vector<8x128xf32>
    %29 = arith.addf %26, %28 : vector<8x128xf32>
    %c0_17 = arith.constant 0 : index
    %c0_18 = arith.constant 0 : index
    %30 = vector.load %arg2[%c0_17, %c0_18] : memref<8x4xf32, #tpu.memory_space<vmem>>, vector<8x4xf32>
    %c0_19 = arith.constant 0 : index
    %c0_20 = arith.constant 0 : index
    %31 = vector.load %arg7[%c0_19, %c0_20] : memref<4x128xf32, #tpu.memory_space<vmem>>, vector<4x128xf32>
    %32 = vector.extract_strided_slice %30 {offsets = [0, 0], sizes = [8, 1], strides = [1, 1]} : vector<8x4xf32> to vector<8x1xf32>
    %33 = vector.extract_strided_slice %31 {offsets = [0, 0], sizes = [1, 128], strides = [1, 1]} : vector<4x128xf32> to vector<1x128xf32>
    %34 = vector.broadcast %32 : vector<8x1xf32> to vector<8x128xf32>
    %35 = vector.broadcast %33 : vector<1x128xf32> to vector<8x128xf32>
    %36 = arith.mulf %34, %35 : vector<8x128xf32>
    %37 = arith.addf %29, %36 : vector<8x128xf32>
    %38 = vector.extract_strided_slice %30 {offsets = [0, 1], sizes = [8, 1], strides = [1, 1]} : vector<8x4xf32> to vector<8x1xf32>
    %39 = vector.extract_strided_slice %31 {offsets = [1, 0], sizes = [1, 128], strides = [1, 1]} : vector<4x128xf32> to vector<1x128xf32>
    %40 = vector.broadcast %38 : vector<8x1xf32> to vector<8x128xf32>
    %41 = vector.broadcast %39 : vector<1x128xf32> to vector<8x128xf32>
    %42 = arith.mulf %40, %41 : vector<8x128xf32>
    %43 = arith.addf %37, %42 : vector<8x128xf32>
    %44 = vector.extract_strided_slice %30 {offsets = [0, 2], sizes = [8, 1], strides = [1, 1]} : vector<8x4xf32> to vector<8x1xf32>
    %45 = vector.extract_strided_slice %31 {offsets = [2, 0], sizes = [1, 128], strides = [1, 1]} : vector<4x128xf32> to vector<1x128xf32>
    %46 = vector.broadcast %44 : vector<8x1xf32> to vector<8x128xf32>
    %47 = vector.broadcast %45 : vector<1x128xf32> to vector<8x128xf32>
    %48 = arith.mulf %46, %47 : vector<8x128xf32>
    %49 = arith.addf %43, %48 : vector<8x128xf32>
    %50 = vector.extract_strided_slice %30 {offsets = [0, 3], sizes = [8, 1], strides = [1, 1]} : vector<8x4xf32> to vector<8x1xf32>
    %51 = vector.extract_strided_slice %31 {offsets = [3, 0], sizes = [1, 128], strides = [1, 1]} : vector<4x128xf32> to vector<1x128xf32>
    %52 = vector.broadcast %50 : vector<8x1xf32> to vector<8x128xf32>
    %53 = vector.broadcast %51 : vector<1x128xf32> to vector<8x128xf32>
    %54 = arith.mulf %52, %53 : vector<8x128xf32>
    %55 = arith.addf %49, %54 : vector<8x128xf32>
    %cst_21 = arith.constant 0.000000e+00 : f32
    %56 = vector.broadcast %cst_21 : f32 to vector<8x128xf32>
    %57 = arith.maximumf %55, %56 : vector<8x128xf32>
    %c0_22 = arith.constant 0 : index
    %c0_23 = arith.constant 0 : index
    %58 = vector.load %arg9[%c0_22, %c0_23] : memref<128x64xf32, #tpu.memory_space<vmem>>, vector<128x64xf32>
    %cst_24 = arith.constant dense<0.000000e+00> : vector<8x64xf32>
    %59 = tpu.matmul %57, %58, %cst_24 {dimension_numbers = #tpu.dot_dimension_numbers<[1], [0], [0], [1], [0, 0, 1, 1], [], []>} : vector<8x128xf32>, vector<128x64xf32>, vector<8x64xf32> -> vector<8x64xf32>
    %c0_25 = arith.constant 0 : index
    %c0_26 = arith.constant 0 : index
    %60 = vector.load %arg10[%c0_25, %c0_26] : memref<1x64xf32, #tpu.memory_space<vmem>>, vector<1x64xf32>
    %61 = vector.broadcast %60 : vector<1x64xf32> to vector<8x64xf32>
    %62 = arith.addf %59, %61 : vector<8x64xf32>
    %cst_27 = arith.constant 0.000000e+00 : f32
    %63 = vector.broadcast %cst_27 : f32 to vector<8x64xf32>
    %64 = arith.maximumf %62, %63 : vector<8x64xf32>
    %c0_28 = arith.constant 0 : index
    %c0_29 = arith.constant 0 : index
    %65 = vector.load %arg11[%c0_28, %c0_29] : memref<1x64xf32, #tpu.memory_space<vmem>>, vector<1x64xf32>
    %66 = vector.broadcast %65 : vector<1x64xf32> to vector<8x64xf32>
    %67 = arith.mulf %64, %66 : vector<8x64xf32>
    %cst_30 = arith.constant dense<0.000000e+00> : vector<8xf32>
    %68 = vector.multi_reduction <add>, %67, %cst_30 [1] : vector<8x64xf32> to vector<8xf32>
    %69 = vector.shape_cast %68 : vector<8xf32> to vector<8x1xf32>
    %c0_31 = arith.constant 0 : index
    %c0_32 = arith.constant 0 : index
    %70 = vector.load %arg12[%c0_31, %c0_32] : memref<1x1xf32, #tpu.memory_space<vmem>>, vector<1x1xf32>
    %71 = vector.broadcast %70 : vector<1x1xf32> to vector<8x1xf32>
    %72 = arith.addf %69, %71 : vector<8x1xf32>
    %c0_33 = arith.constant 0 : index
    %c0_34 = arith.constant 0 : index
    %73 = vector.load %arg13[%c0_33, %c0_34] : memref<8x1xf32, #tpu.memory_space<vmem>>, vector<8x1xf32>
    tpu.vector_store %arg13[%c0_33, %c0_34], %72 {strides = array<i32>} : memref<8x1xf32, #tpu.memory_space<vmem>>, vector<8x1xf32>,
    return
  }
  func.func @transform_0(%arg0: i32) -> (i32, i32) {
    %c0_i32 = arith.constant 0 : i32
    %c0_i32_0 = arith.constant 0 : i32
    return %arg0, %c0_i32 : i32, i32
  }
  func.func @transform_1(%arg0: i32) -> (i32, i32) {
    %c0_i32 = arith.constant 0 : i32
    %c0_i32_0 = arith.constant 0 : i32
    return %arg0, %c0_i32 : i32, i32
  }
  func.func @transform_2(%arg0: i32) -> (i32, i32) {
    %c0_i32 = arith.constant 0 : i32
    %c0_i32_0 = arith.constant 0 : i32
    %c0_i32_1 = arith.constant 0 : i32
    return %c0_i32, %c0_i32_0 : i32, i32
  }
  func.func @transform_3(%arg0: i32) -> (i32, i32) {
    %c0_i32 = arith.constant 0 : i32
    %c0_i32_0 = arith.constant 0 : i32
    %c0_i32_1 = arith.constant 0 : i32
    return %c0_i32, %c0_i32_0 : i32, i32
  }
  func.func @transform_4(%arg0: i32) -> (i32, i32) {
    %c0_i32 = arith.constant 0 : i32
    %c0_i32_0 = arith.constant 0 : i32
    %c0_i32_1 = arith.constant 0 : i32
    return %c0_i32, %c0_i32_0 : i32, i32
  }
  func.func @transform_5(%arg0: i32) -> (i32, i32) {
    %c0_i32 = arith.constant 0 : i32
    %c0_i32_0 = arith.constant 0 : i32
    %c0_i32_1 = arith.constant 0 : i32
    return %c0_i32, %c0_i32_0 : i32, i32
  }
  func.func @transform_6(%arg0: i32) -> (i32, i32) {
    %c0_i32 = arith.constant 0 : i32
    %c0_i32_0 = arith.constant 0 : i32
    %c0_i32_1 = arith.constant 0 : i32
    return %c0_i32, %c0_i32_0 : i32, i32
  }
  func.func @transform_7(%arg0: i32) -> (i32, i32) {
    %c0_i32 = arith.constant 0 : i32
    %c0_i32_0 = arith.constant 0 : i32
    %c0_i32_1 = arith.constant 0 : i32
    return %c0_i32, %c0_i32_0 : i32, i32
  }
  func.func @transform_8(%arg0: i32) -> (i32, i32) {
    %c0_i32 = arith.constant 0 : i32
    %c0_i32_0 = arith.constant 0 : i32
    %c0_i32_1 = arith.constant 0 : i32
    return %c0_i32, %c0_i32_0 : i32, i32
  }
  func.func @transform_9(%arg0: i32) -> (i32, i32) {
    %c0_i32 = arith.constant 0 : i32
    %c0_i32_0 = arith.constant 0 : i32
    %c0_i32_1 = arith.constant 0 : i32
    return %c0_i32, %c0_i32_0 : i32, i32
  }
  func.func @transform_10(%arg0: i32) -> (i32, i32) {
    %c0_i32 = arith.constant 0 : i32
    %c0_i32_0 = arith.constant 0 : i32
    %c0_i32_1 = arith.constant 0 : i32
    return %c0_i32, %c0_i32_0 : i32, i32
  }
  func.func @transform_11(%arg0: i32) -> (i32, i32) {
    %c0_i32 = arith.constant 0 : i32
    %c0_i32_0 = arith.constant 0 : i32
    %c0_i32_1 = arith.constant 0 : i32
    return %c0_i32, %c0_i32_0 : i32, i32
  }
  func.func @transform_12(%arg0: i32) -> (i32, i32) {
    %c0_i32 = arith.constant 0 : i32
    %c0_i32_0 = arith.constant 0 : i32
    return %arg0, %c0_i32 : i32, i32
  }
}

</mosaic_0001>

<bundles_post_ra>
// kernel: critic_forward.3
= control target key start
LH: loop header
LB: loop body
LE: loop exit
PB: predicated region body
PF: predicated region fallthrough
CT: control target
= control target key end

     0   :  { %v500_v0 = vmov 0.0|0.0   ;;  %vm501_vm0 = vmmov 0   ;;  %v502_v4 = vmov 0.0   ;;  %v503_v7 = vmov 0   ;;  %s731_s5 = inlined_call_operand.vmem [shape: f32[128,128], index: 5, kind: input, shape index: {}]   ;;  %s732_s2 = inlined_call_operand.vmem [shape: f32[2,128], index: 2, kind: input, shape index: {}]   ;;  %s733_s1 = inlined_call_operand.vmem [shape: f32[8,4], index: 1, kind: input, shape index: {}]   ;;  %s734_s8 = inlined_call_operand.vmem [shape: f32[128,64], index: 8, kind: input, shape index: {}]   ;;  %s735_s3 = inlined_call_operand.vmem [shape: f32[1,128], index: 3, kind: input, shape index: {}]   ;;  %s736_s0 = inlined_call_operand.vmem [shape: f32[8,128], index: 0, kind: input, shape index: {}]   ;;  %s737_s4 = inlined_call_operand.vmem [shape: f32[1,128], index: 4, kind: input, shape index: {}]   ;;  %s738_s6 = inlined_call_operand.vmem [shape: f32[4,128], index: 6, kind: input, shape index: {}]   ;;  %s739_s7 = inlined_call_operand.vmem [shape: f32[1,128], index: 7, kind: input, shape index: {}]   ;;  %s740_s11 = inlined_call_operand.<no memory space> [shape: f32[1,1], index: 11, kind: input, shape index: {}]   ;;  %s741_s9 = inlined_call_operand.vmem [shape: f32[1,64], index: 9, kind: input, shape index: {}]   ;;  %s742_s10 = inlined_call_operand.vmem [shape: f32[1,64], index: 10, kind: input, shape index: {}]   ;;  %s743_s12 = inlined_call_operand.vmem [shape: f32[8,1], index: 12, kind: output, shape index: {}]  }
   0x1   :  { %438 = vmatprep.subr.bf16.mxu0 %v500_v0  ;;  %v73_v1 = vld [vmem:[%s731_s5] sm:$0xff]  ;;  %v74_v2 = vld [vmem:[%s731_s5 + $0x8] sm:$0xff]  ;;  %v75_v3 = vld [vmem:[%s731_s5 + $0x10] sm:$0xff]  ;;  %400 = vmatprep.mubr.msk.f32.mxu0 %vm501_vm0, %v502_v4  ;;  %v504_v8 = vmov 2   ;;  %v505_v32 = vmov 1   ;;  %v506_v35 = vmov 3   ;;  %v59_v43 = vlaneseq }
   0x2   :  { %v439_v5 = vpack.c.bf16 %v74_v2, %v73_v1  ;;  %v76_v6 = vld [vmem:[%s731_s5 + $0x18] sm:$0xff]  ;;  %493 = vset.pattern.permute.xlu0 %v503_v7  ;;  %495 = vset.pattern.permute.xlu1 %v504_v8  ;;  %v77_v10 = vld [vmem:[%s731_s5 + $0x20] sm:$0xff]  ;;  %v78_v11 = vld [vmem:[%s731_s5 + $0x28] sm:$0xff]  ;;  %vm312_vm1 = vcmask 523264   ;;  %vm324_vm2 = vcmask 7168  }
   0x3   :  { %462 = vmatprep.subr.bf16.mxu1 %v500_v0  ;;  %435 = vmatprep.mubr.msk.f32.mxu1 %vm501_vm0, %v502_v4  ;;  %v442_v9 = vpack.c.bf16 %v76_v6, %v75_v3  ;;  %v43_v12 = vld [vmem:[%s732_s2] sm:$0x1]  ;;  %v45_v13 = vld [vmem:[%s732_s2 + $0x1] sm:$0x1]  ;;  %v79_v14 = vld [vmem:[%s731_s5 + $0x30] sm:$0xff]  ;;  %v445_v17 = vpack.c.bf16 %v78_v11, %v77_v10  ;;  %v667_v50 = vshrl.u32 %v59_v43, 7 }
   0x4   :  { %440 = vmatpush3.bf16.msra.mxu0 %v439_v5  ;;  %v602_v15 = vmul.f32 0.125, %v43_v12  ;;  %v46_v16 = vmul.f32 0.125, %v45_v13  ;;  %v80_v18 = vld [vmem:[%s731_s5 + $0x38] sm:$0xff]  ;;  %v166_v19 = vld [vmem:[%s733_s1] sm:$0xff]  ;;  %v211_v22 = vld [vmem:[%s734_s8 + $0x8] sm:$0xff] }
   0x5   :  { %441 = vmatprep.subr.bf16.mxu0 %v500_v0  ;;  %v210_v20 = vld [vmem:[%s734_s8] sm:$0xff]  ;;  %170 = vperm.xlu0 %493, %v166_v19   ;;  %v212_v23 = vld [vmem:[%s734_s8 + $0x10] sm:$0xff]  ;;  %v213_v24 = vld [vmem:[%s734_s8 + $0x18] sm:$0xff]  ;;  %v448_v27 = vpack.c.bf16 %v80_v18, %v79_v14  ;;  %v61_v56 = vsub.s32 0, %v667_v50  ;;  %v195_v18 = vsub.s32 2, %v667_v50 }
   0x6   :  { %v47_v21 = vmul.f32 %v602_v15, %v602_v15  ;;  %190 = vperm.xlu1 %495, %v166_v19   ;;  %v463_v25 = vpack.c.bf16 %v211_v22, %v210_v20  ;;  %v81_v28 = vld [vmem:[%s731_s5 + $0x40] sm:$0xff]  ;;  %v466_v29 = vpack.c.bf16 %v213_v24, %v212_v23  ;;  %v82_v30 = vld [vmem:[%s731_s5 + $0x48] sm:$0xff]  ;;  %v83_v38 = vld [vmem:[%s731_s5 + $0x50] sm:$0xff] }
   0x7   :  { %v214_v33 = vld [vmem:[%s734_s8 + $0x20] sm:$0xff]  ;;  %v215_v34 = vld [vmem:[%s734_s8 + $0x28] sm:$0xff]  ;;  %v451_v37 = vpack.c.bf16 %v82_v30, %v81_v28  ;;  %v84_v40 = vld [vmem:[%s731_s5 + $0x58] sm:$0xff] }
   0x8   :  { %443 = vmatpush3.bf16.msra.mxu0 %v442_v9  ;;  %v48_v26 = vsub.f32 %v46_v16, %v47_v21  ;;  %464 = vmatpush3.bf16.msra.mxu1 %v463_v25  ;;  %v469_v39 = vpack.c.bf16 %v215_v34, %v214_v33  ;;  %v216_v41 = vld [vmem:[%s734_s8 + $0x30] sm:$0xff]  ;;  %v217_v42 = vld [vmem:[%s734_s8 + $0x38] sm:$0xff]  ;;  %v454_v44 = vpack.c.bf16 %v84_v40, %v83_v38  ;;  %v85_v45 = vld [vmem:[%s731_s5 + $0x60] sm:$0xff]  ;;  %v185_v16 = vsub.s32 1, %v667_v50 }
   0x9   :  { %444 = vmatprep.subr.bf16.mxu0 %v500_v0  ;;  %494 = vset.pattern.permute.xlu0 %v505_v32  ;;  %v472_v46 = vpack.c.bf16 %v217_v42, %v216_v41  ;;  %v86_v47 = vld [vmem:[%s731_s5 + $0x68] sm:$0xff]  ;;  %v218_v48 = vld [vmem:[%s734_s8 + $0x40] sm:$0xff]  ;;  %v87_v53 = vld [vmem:[%s731_s5 + $0x70] sm:$0xff]  ;;  %v205_v21 = vsub.s32 3, %v667_v50 }
   0xa   :  { %v49_v31 = vmax.f32 %v48_v26, 0.0  ;;  %180 = vperm.xlu0 %494, %v166_v19   ;;  %496 = vset.pattern.permute.xlu1 %v506_v35  ;;  %v219_v49 = vld [vmem:[%s734_s8 + $0x48] sm:$0xff]  ;;  %v457_v51 = vpack.c.bf16 %v86_v47, %v85_v45  ;;  %v88_v54 = vld [vmem:[%s731_s5 + $0x78] sm:$0xff]  ;;  %v52_v55 = vld [vmem:[%s735_s3] sm:$0x1] }
   0xb   :  { %200 = vperm.xlu1 %496, %v166_v19   ;;  %465 = vmatprep.subr.bf16.mxu1 %v500_v0  ;;  %v475_v52 = vpack.c.bf16 %v219_v49, %v218_v48  ;;  %v460_v58 = vpack.c.bf16 %v88_v54, %v87_v53  ;;  %v54_v60 = vld [vmem:[%s737_s4] sm:$0x1]  ;;  %v220_v6 = vld [vmem:[%s734_s8 + $0x50] sm:$0xff]  ;;  %v221_v7 = vld [vmem:[%s734_s8 + $0x58] sm:$0xff] }
   0xc   :  { %446 = vmatpush3.bf16.msra.mxu0 %v445_v17  ;;  %v50_v36 = vadd.f32 1e-05, %v49_v31  ;;  %467 = vmatpush3.bf16.msra.mxu1 %v466_v29  ;;  %v57_v61 = vld [vmem:[%s736_s0] sm:$0xff]  ;;  %v478_v8 = vpack.c.bf16 %v221_v7, %v220_v6  ;;  %v223_v10 = vld [vmem:[%s734_s8 + $0x68] sm:$0xff]  ;;  %v224_v12 = vld [vmem:[%s734_s8 + $0x70] sm:$0xff] }
   0xd   :  { %447 = vmatprep.subr.bf16.mxu0 %v500_v0  ;;  %468 = vmatprep.subr.bf16.mxu1 %v500_v0  ;;  %v222_v9 = vld [vmem:[%s734_s8 + $0x60] sm:$0xff]  ;;  %v225_v13 = vld [vmem:[%s734_s8 + $0x78] sm:$0xff] }
   0xe   :  { %498 = vrsqrt.f32 %v50_v36  ;;  %497 = vset.pattern.permute.xlu0 %v506_v35  ;;  %v481_v11 = vpack.c.bf16 %v223_v10, %v222_v9  ;;  %v484_v14 = vpack.c.bf16 %v225_v13, %v224_v12  ;;  %v167_v17 = vld [vmem:[%s738_s6] sm:$0xf] }
   0xf   :  { %v176_v19 = vrot.slane %v167_v17, %v61_v56  ;;  %v186_v20 = vrot.slane %v167_v17, %v185_v16  ;;  %v330_v22 = vld [vmem:[%s739_s7] ss:$0 sm:$0xff]  ;;  %v196_v25 = vrot.slane %v167_v17, %v195_v18  ;;  %v206_v30 = vrot.slane %v167_v17, %v205_v21 }
  0x10   :  { %449 = vmatpush3.bf16.msra.mxu0 %v448_v27  ;;  %470 = vmatpush3.bf16.msra.mxu1 %v469_v39  ;;  %v17_v39 = vstv %s740_s11  ;;  %v331_v40 = vld [vmem:[%s741_s9] ss:$0 sm:$0xff] }
  0x11   :  { %450 = vmatprep.subr.bf16.mxu0 %v500_v0  ;;  %471 = vmatprep.subr.bf16.mxu1 %v500_v0  ;;  %18 = vst [vmem:[#allocation2] sm:$0x1] %v17_v39 }
  0x14   :  { %452 = vmatpush3.bf16.msra.mxu0 %v451_v37  ;;  %473 = vmatpush3.bf16.msra.mxu1 %v472_v46 }
  0x15   :  { %453 = vmatprep.subr.bf16.mxu0 %v500_v0  ;;  %474 = vmatprep.subr.bf16.mxu1 %v500_v0 }
  0x18   :  { %455 = vmatpush3.bf16.msra.mxu0 %v454_v44  ;;  %v499_v57 = vpop.eup %498  ;;  %476 = vmatpush3.bf16.msra.mxu1 %v475_v52  ;;  %v332_v44 = vld [vmem:[%s742_s10] ss:$0 sm:$0xff] }
  0x19   :  { %456 = vmatprep.subr.bf16.mxu0 %v500_v0  ;;  %v53_v59 = vmul.f32 %v499_v57, %v52_v55  ;;  %477 = vmatprep.subr.bf16.mxu1 %v500_v0  ;;  %v333_v48 = vld [vmem:[#allocation2] ss:$0 sm:$0xff] }
  0x1b   :  { %v55_v62 = vmul.f32 %v53_v59, %v602_v15  ;;  %v62_v63 = vrot.slane %v53_v59, %v61_v56 }
  0x1c   :  { %458 = vmatpush3.bf16.msra.mxu0 %v457_v51  ;;  %479 = vmatpush3.bf16.msra.mxu1 %v478_v8 }
  0x1d   :  { %459 = vmatprep.subr.bf16.mxu0 %v500_v0  ;;  %v56_v1 = vsub.f32 %v54_v60, %v55_v62  ;;  %v64_v2 = vmul.f32 %v62_v63, %v57_v61  ;;  %480 = vmatprep.subr.bf16.mxu1 %v500_v0 }
  0x1f   :  { %v69_v3 = vrot.slane %v56_v1, %v61_v56 }
  0x20   :  { %461 = vmatpush3.bf16.msra.mxu0 %v460_v58  ;;  %482 = vmatpush3.bf16.msra.mxu1 %v481_v11 }
  0x21   :  { %v71_v4 = vadd.f32 %v69_v3, %v64_v2  ;;  %483 = vmatprep.subr.bf16.mxu1 %v500_v0 }
  0x23   :  { %v72_v5 = vmax.f32 %v71_v4, 0.0 }
  0x24   :  { %485 = vmatpush3.bf16.msra.mxu1 %v484_v14 }
  0x25   :  { %401 = vmatmul.mubr.f32.vlgmr.msra.gmra.mrb[0].mxu0 %v72_v5 }
  0x84   :  { %v171_v15 = vpop.permute.xlu0 %170 }
  0x85   :  { %v191_v0 = vpop.permute.xlu1 %190  ;;  %v177_v26 = vmul.f32 %v176_v19, %v171_v15 }
  0x86   :  { %v197_v33 = vmul.f32 %v196_v25, %v191_v0 }
  0x89   :  { %v181_v23 = vpop.permute.xlu0 %180 }
  0x8a   :  { %v187_v29 = vmul.f32 %v186_v20, %v181_v23  ;;  %v201_v31 = vpop.permute.xlu1 %200 }
  0x8b   :  { %v207_v35 = vmul.f32 %v206_v30, %v201_v31 }
  0xf8   :  { %v162_v24 = vpop.f32.mrb[0].mxu0 }
  0xf9   :  { %v163_v27 = vadd.f32 %v330_v22, %v162_v24  ;;  %v402_v28 = vpop.f32.mrb[1].mxu0 }
  0xfb   :  { %v178_v32 = vadd.f32 %v177_v26, %v163_v27 }
  0xfd   :  { %v188_v34 = vadd.f32 %v187_v29, %v178_v32 }
  0xff   :  { %v198_v36 = vadd.f32 %v197_v33, %v188_v34 }
 0x101   :  { %v208_v37 = vadd.f32 %v207_v35, %v198_v36 }
 0x103   :  { %v209_v38 = vmax.f32 %v208_v37, 0.0 }
 0x105   :  { %436 = vmatmul.mubr.f32.vlgmr.msra.gmra.mrb[0].mxu1 %v209_v38 }
 0x1d8   :  { %v299_v41 = vpop.f32.mrb[0].mxu1 }
 0x1d9   :  { %v300_v42 = vadd.f32 %v331_v40, %v299_v41  ;;  %v437_v43 = vpop.f32.mrb[1].mxu1 }
 0x1db   :  { %v303_v45 = vmax.f32 %v300_v42, 0.0 }
 0x1dd   :  { %v311_v46 = vmul.f32 %v332_v44, %v303_v45 }
 0x1df   :  { %v313_v47 = vsel %vm312_vm1, %v311_v46, 0.0 }
 0x1e0   :  { %314 = vadd.xlane.f32.xlu1 %v313_v47 }
 0x26d   :  { %v315_v49 = vpop.xlane.xlu1 %314 }
 0x26e   :  { %v323_v50 = vadd.f32 %v333_v48, %v315_v49 }
 0x270   :  { %325 = vst.msk [vmem:[%s743_s12] sm:$0xff] %vm324_vm2, %v323_v50 }

// kernel: critic_forward.2
= control target key start
LH: loop header
LB: loop body
LE: loop exit
PB: predicated region body
PF: predicated region fallthrough
CT: control target
= control target key end

     0   :  { %10 = vsyncpa [#allocation3], 0  ;;  %s363_s0 = inlined_call_operand.hbm [shape: f32[8,32], index: 0, kind: input, shape index: {}]   ;;  %s364_s1 = inlined_call_operand.hbm [shape: f32[32,128], index: 1, kind: input, shape index: {}]   ;;  %s365_s2 = inlined_call_operand.hbm [shape: f32[1,128], index: 2, kind: input, shape index: {}]   ;;  %s366_s3 = inlined_call_operand.vmem [shape: f32[8,128], index: 3, kind: output, shape index: {0}]   ;;  %s367_s4 = inlined_call_operand.vmem [shape: f32[2,128], index: 4, kind: output, shape index: {1}]  }
   0x1   :  { %11 = vsyncpa [#allocation5], 0  ;;  %s282_s15 = smov [#allocation4]   ;;  %s212_s19 = scalar_lea.hbm %s364_s1, 512 }
   0x2   :  { %s27_s16 = sshll.u32 %s282_s15, 4  ;;  %p213_p0 = scmp.ne.s32.totalorder %s364_s1, %s212_s19  ;;  %s28_s16 = int_to_ptr.vmem [resolvable:$true] %s27_s16 }
   0x3   :  { %p216_p1 = scmp.lt.u32.totalorder %s212_s19, %s364_s1 }
   0x5   :  { %p218_p2 = pnand %p216_p1, %p213_p0 }
   0x7   :  { %221 = shalt.err (!%p218_p2)
}
   0x8   :  { %s222_s24 = scalar_lea.vmem %s28_s16, 512  ;;  %p227_p4 = scmp.lt.s32.totalorder %s28_s16, %s28_s16 }
   0x9   :  { %p223_p3 = scmp.ne.s32.totalorder %s28_s16, %s222_s24  ;;  %p228_p5 = scmp.lt.s32.totalorder %s222_s24, %s222_s24 }
   0xb   :  { %p229_p6 = por %p228_p5, %p227_p4 }
   0xd   :  { %p230_p7 = pnand %p229_p6, %p223_p3 }
   0xf   :  { %233 = shalt.err (!%p230_p7)
}
  0x10   :  { %s283_s25 = smov 128   ;;  %s284_s26 = smov 8  }
  0x11   :  { %33 = dma.hbm_to_vmem [thread:$0]  %s364_s1, 512, %s28_s16, [#allocation5], %s283_s25, %s283_s25, %s284_s26  }
  0x12   :  { %s285_s29 = smov [#allocation2]   ;;  %s286_s5 = smov [#allocation6]  }
  0x13   :  { %s18_s30 = sshll.u32 %s285_s29, 4  ;;  %s40_s6 = sshll.u32 %s286_s5, 4  ;;  %s19_s30 = int_to_ptr.vmem [resolvable:$true] %s18_s30  ;;  %s41_s6 = int_to_ptr.vmem [resolvable:$true] %s40_s6 }
  0x14   :  { %s234_s9 = scalar_lea.hbm %s363_s0, 128 }
  0x15   :  { %p235_p8 = scmp.ne.s32.totalorder %s363_s0, %s234_s9  ;;  %p238_p9 = scmp.lt.u32.totalorder %s234_s9, %s363_s0 }
  0x17   :  { %p240_p10 = pnand %p238_p9, %p235_p8 }
  0x19   :  { %243 = shalt.err (!%p240_p10)
}
  0x1a   :  { %s244_s1 = scalar_lea.vmem %s19_s30, 128  ;;  %p249_p12 = scmp.lt.s32.totalorder %s19_s30, %s19_s30 }
  0x1b   :  { %p245_p11 = scmp.ne.s32.totalorder %s19_s30, %s244_s1  ;;  %p250_p13 = scmp.lt.s32.totalorder %s244_s1, %s244_s1 }
  0x1d   :  { %p251_p0 = por %p250_p13, %p249_p12 }
  0x1f   :  { %p252_p1 = pnand %p251_p0, %p245_p11 }
  0x21   :  { %255 = shalt.err (!%p252_p1)
}
  0x22   :  { %21 = dma.hbm_to_vmem [thread:$0]  %s363_s0, 128, %s19_s30, [#allocation3]  }
  0x23   :  { %s256_s18 = scalar_lea.hbm %s365_s2, 16 }
  0x24   :  { %p257_p2 = scmp.ne.s32.totalorder %s365_s2, %s256_s18  ;;  %p260_p3 = scmp.lt.u32.totalorder %s256_s18, %s365_s2 }
  0x26   :  { %p262_p4 = pnand %p260_p3, %p257_p2 }
  0x28   :  { %265 = shalt.err (!%p262_p4)
}
  0x29   :  { %s266_s23 = scalar_lea.vmem %s41_s6, 16  ;;  %s270_s24 = scalar_lea.vmem %s41_s6, 32 }
  0x2a   :  { %p267_p5 = scmp.ne.s32.totalorder %s41_s6, %s266_s23  ;;  %p271_p6 = scmp.lt.s32.totalorder %s41_s6, %s41_s6 }
  0x2b   :  { %p272_p7 = scmp.lt.s32.totalorder %s270_s24, %s266_s23 }
  0x2d   :  { %p273_p8 = por %p272_p7, %p271_p6 }
  0x2f   :  { %p274_p9 = pnand %p273_p8, %p267_p5 }
  0x31   :  { %277 = shalt.err (!%p274_p9)
}
  0x32   :  { %43 = dma.hbm_to_vmem [thread:$0]  %s365_s2, 16, %s41_s6, [#allocation5]  }
  0x33   :  { %278 = dma.done.wait [#allocation3], 128  }
  0x34   :  { %279 = vsyncadd [#allocation3], 4294967168 }
  0x35   :  { %280 = dma.done.wait [#allocation5], 528  }
  0x36   :  { %281 = vsyncadd [#allocation5], 4294966768  ;;  %v287_v0 = vmov 0.0|0.0   ;;  %vm288_vm0 = vmmov 0   ;;  %v289_v1 = vmov 0.0   ;;  %v54_v2 = vld [vmem:[#allocation4] sm:$0xff] }
  0x37   :  { %198 = vmatprep.subr.bf16.mxu0 %v287_v0  ;;  %195 = vmatprep.mubr.msk.f32.mxu0 %vm288_vm0, %v289_v1  ;;  %166 = vst [vmem:[%s367_s4] sm:$0x3] %v289_v1  ;;  %v55_v3 = vld [vmem:[#allocation4 + $0x8] sm:$0xff]  ;;  %v56_v4 = vld [vmem:[#allocation4 + $0x10] sm:$0xff]  ;;  %v57_v6 = vld [vmem:[#allocation4 + $0x18] sm:$0xff]  ;;  %vm65_vm1 = vcmask 261120   ;;  %vm160_vm2 = vcmask 1040384  }
  0x38   :  { %v199_v5 = vpack.c.bf16 %v55_v3, %v54_v2  ;;  %v202_v7 = vpack.c.bf16 %v57_v6, %v56_v4  ;;  %v53_v8 = vld [vmem:[#allocation2] sm:$0xff]  ;;  %v180_v9 = vld [vmem:[#allocation6] ss:$0 sm:$0xff] }
  0x3a   :  { %200 = vmatpush3.bf16.msra.mxu0 %v199_v5 }
  0x3b   :  { %201 = vmatprep.subr.bf16.mxu0 %v287_v0 }
  0x3e   :  { %203 = vmatpush3.bf16.msra.mxu0 %v202_v7  ;;  %v167_v26 = vld [vmem:[%s367_s4] sm:$0x3] }
  0x41   :  { %196 = vmatmul.mubr.msk.f32.vlgmr.msra.gmra.mrb[0].mxu0 %vm65_vm1, %v53_v8 }
 0x114   :  { %v135_v10 = vpop.f32.mrb[0].mxu0 }
 0x115   :  { %v136_v11 = vadd.f32 %v180_v9, %v135_v10  ;;  %v197_v12 = vpop.f32.mrb[1].mxu0 }
 0x117   :  { %139 = vst [vmem:[%s366_s3] sm:$0xff] %v136_v11  ;;  %v147_v13 = vrot.slane %v136_v11, 4  ;;  %v153_v14 = vmul.f32 %v136_v11, %v136_v11 }
 0x119   :  { %v148_v15 = vadd.f32 %v147_v13, %v136_v11  ;;  %v154_v16 = vrot.slane %v153_v14, 4 }
 0x11b   :  { %v149_v17 = vrot.slane %v148_v15, 2  ;;  %v155_v18 = vadd.f32 %v154_v16, %v153_v14 }
 0x11d   :  { %v150_v19 = vadd.f32 %v149_v17, %v148_v15  ;;  %v156_v20 = vrot.slane %v155_v18, 2 }
 0x11f   :  { %v151_v21 = vrot.slane %v150_v19, 1  ;;  %v157_v22 = vadd.f32 %v156_v20, %v155_v18 }
 0x121   :  { %v158_v23 = vrot.slane %v157_v22, 1  ;;  %v152_v24 = vadd.f32 %v151_v21, %v150_v19 }
 0x123   :  { %v159_v25 = vadd.f32 %v158_v23, %v157_v22 }
 0x125   :  { %v161_v27 = vsel %vm160_vm2, %v152_v24, %v159_v25 }
 0x126   :  { %v168_v28 = vadd.f32 %v167_v26, %v161_v27 }
 0x128   :  { %169 = vst [vmem:[%s367_s4] sm:$0x3] %v168_v28 }
 0x129   :  { %178 = vsyncpa [#allocation3], 1 }
 0x12a   :  { %179 = vsyncpa [#allocation5], 1 }

</bundles_post_ra>
